<compile_context>
chip_gen: v7x
topology: tpu7x:2x2x1
jax: 0.10.0
libtpu: 0.0.40
codegen_flags: <defaults>
</compile_context>

<pallas_src>
import functools

import jax
import jax.numpy as jnp
from jax.experimental import pallas as pl
from jax.experimental.pallas import tpu as pltpu


_VMEM_LIMIT_BYTES = 32 * 1024 * 1024  # explicit scoped VMEM; tiles below use < 4 MiB


def _round_up(a, b):
    return (a + b - 1) // b * b


def _pad_to(arr, shape, value=0.0):
    """Zero/constant pad `arr` up to `shape` (no-op if already that shape)."""
    if tuple(arr.shape) == tuple(shape):
        return arr
    out = jnp.full(shape, value, arr.dtype)
    return out.at[tuple(slice(0, s) for s in arr.shape)].set(arr)


# ------------------- pass 1: xw = x @ W (flattened over B*N) -------------------
def _xw_kernel(x_ref, w_ref, o_ref):
    o_ref[...] = jnp.dot(
        x_ref[...], w_ref[...], preferred_element_type=jnp.float32
    ).astype(o_ref.dtype)


# ------------------- pass 2: out = relu(adj @ xw [/ D]) -------------------
def _aggregate_kernel(adj_ref, xw_ref, o_ref, acc_ref):
    k = pl.program_id(2)

    @pl.when(k == 0)
    def _init():
        acc_ref[...] = jnp.zeros_like(acc_ref)

    acc_ref[...] += jnp.einsum(
        "bmk,bkf->bmf", adj_ref[...], xw_ref[...],
        preferred_element_type=jnp.float32)

    @pl.when(k == pl.num_programs(2) - 1)
    def _finalize():
        o_ref[...] = jnp.maximum(acc_ref[...], 0.0).astype(o_ref.dtype)


def _aggregate_kernel_d(adj_ref, xw_ref, d_ref, o_ref, acc_ref):
    k = pl.program_id(2)

    @pl.when(k == 0)
    def _init():
        acc_ref[...] = jnp.zeros_like(acc_ref)

    acc_ref[...] += jnp.einsum(
        "bmk,bkf->bmf", adj_ref[...], xw_ref[...],
        preferred_element_type=jnp.float32)

    @pl.when(k == pl.num_programs(2) - 1)
    def _finalize():
        # exact reciprocal keeps zero-degree semantics identical to a divide
        inv_d = pl.reciprocal(d_ref[...], approx=False)
        o_ref[...] = jnp.maximum(acc_ref[...] * inv_d, 0.0).astype(o_ref.dtype)


@functools.partial(jax.jit, static_argnames=("use_bf16",))
def basic_block(x, adj, weight, D=None, *, use_bf16=False):
    """BasicBlock forward. x:(B,N,Fin) adj:(B,N,N) weight:(Fin,Fout) D:(B,N,1)|None."""
    B, N, Fin = x.shape
    Fout = weight.shape[1]
    out_dtype = x.dtype
    cdt = jnp.bfloat16 if use_bf16 else x.dtype

    # ---- shape-adaptive tiling decisions ----
    Fout_p = _round_up(Fout, 128)                 # lane-dense output stores
    if N <= 512:
        # whole (padded) adjacency row block per step, no k loop
        N_pad = _round_up(N, 8)
        tm = tk = N_pad
        # batch several graphs per grid step (~<=1 MiB adj tile) to amortize
        # the ~0.35us fixed per-step cost on tiny problems
        Bt = max(1, min(B, (1 << 20) // (4 * N_pad * N_pad)))
    else:
        tm, tk = 256, 512                         # fits v7x's 64 MiB VMEM with headroom
        N_pad = _round_up(N, 512)
        Bt = 1
    B_pad = _round_up(B, Bt)

    # ---- pad operands (zero padding is an exact no-op for both reductions) ----
    w_p = _pad_to(weight.astype(cdt), (Fin, Fout_p))
    x_p = _pad_to(x.astype(cdt), (B_pad, N_pad, Fin))
    adj_p = _pad_to(adj.astype(cdt), (B_pad, N_pad, N_pad))

    # ---- pass 1: xw, flattened (B_pad*N_pad, Fin) @ (Fin, Fout_p) ----
    BN = B_pad * N_pad
    tmx = min(512, BN)
    xw = pl.pallas_call(
        _xw_kernel,
        out_shape=jax.ShapeDtypeStruct((BN, Fout_p), cdt),
        grid_spec=pltpu.PrefetchScalarGridSpec(
            num_scalar_prefetch=0,
            grid=(pl.cdiv(BN, tmx),),
            in_specs=[pl.BlockSpec((tmx, Fin), lambda i: (i, 0)),
                      pl.BlockSpec((Fin, Fout_p), lambda i: (0, 0))],
            out_specs=pl.BlockSpec((tmx, Fout_p), lambda i: (i, 0)),
        ),
        compiler_params=pltpu.CompilerParams(
            dimension_semantics=("parallel",),
            vmem_limit_bytes=_VMEM_LIMIT_BYTES),
    )(x_p.reshape(BN, Fin), w_p)
    xw = xw.reshape(B_pad, N_pad, Fout_p)

    # ---- pass 2: tiled adjacency reduction with f32 accumulator ----
    grid = (B_pad // Bt, N_pad // tm, N_pad // tk)
    adj_spec = pl.BlockSpec((Bt, tm, tk), lambda b, m, k: (b, m, k))
    xw_spec = pl.BlockSpec((Bt, tk, Fout_p), lambda b, m, k: (b, k, 0))
    o_spec = pl.BlockSpec((Bt, tm, Fout_p), lambda b, m, k: (b, m, 0))
    scratch = [pltpu.VMEM((Bt, tm, Fout_p), jnp.float32)]
    cparams = pltpu.CompilerParams(
        dimension_semantics=("parallel", "parallel", "arbitrary"),
        vmem_limit_bytes=_VMEM_LIMIT_BYTES)
    out_shape = jax.ShapeDtypeStruct((B_pad, N_pad, Fout_p), out_dtype)

    if D is None:
        out_p = pl.pallas_call(
            _aggregate_kernel,
            out_shape=out_shape,
            grid_spec=pltpu.PrefetchScalarGridSpec(
                num_scalar_prefetch=0,
                grid=grid,
                in_specs=[adj_spec, xw_spec],
                out_specs=o_spec,
                scratch_shapes=scratch),
            compiler_params=cparams,
        )(adj_p, xw)
    else:
        d = D.reshape(B, N, 1).astype(jnp.float32)
        # pad with ones so padded rows never produce inf/NaN noise
        d_p = _pad_to(d, (B_pad, N_pad, 1), value=1.0)
        d_spec = pl.BlockSpec((Bt, tm, 1), lambda b, m, k: (b, m, 0))
        out_p = pl.pallas_call(
            _aggregate_kernel_d,
            out_shape=out_shape,
            grid_spec=pltpu.PrefetchScalarGridSpec(
                num_scalar_prefetch=0,
                grid=grid,
                in_specs=[adj_spec, xw_spec, d_spec],
                out_specs=o_spec,
                scratch_shapes=scratch),
            compiler_params=cparams,
        )(adj_p, xw, d_p)

    return out_p[:B, :N, :Fout]


def _reference(x, adj, weight, D=None):
    xw = jnp.einsum("bnf,fo->bno", x, weight)
    out = jnp.einsum("bnm,bmo->bno", adj, xw)
    if D is not None:
        out = out / D
    return jnp.maximum(out, 0.0)


if __name__ == "__main__":
    # Small shapes consistent with the module: batch=2, nodes=16,
    # inplanes=32, planes=32.
    B, N, INPLANES, PLANES = 2, 16, 32, 32
    key = jax.random.PRNGKey(0)
    kx, kadj, kw = jax.random.split(key, 3)

    x = jax.random.normal(kx, (B, N, INPLANES), dtype=jnp.float32)
    adj = jax.random.uniform(kadj, (B, N, N), dtype=jnp.float32)
    # Deterministic init matching GraphConv.reset_parameters:
    # uniform(-stdv, stdv) with stdv = 1/sqrt(out_features). bias=False.
    stdv = 1.0 / (PLANES ** 0.5)
    weight = jax.random.uniform(
        kw, (INPLANES, PLANES), dtype=jnp.float32, minval=-stdv, maxval=stdv)

    # dropout=0.0 in the module default -> dropout branch is a no-op.
    out = jax.block_until_ready(basic_block(x, adj, weight, D=None))
    ref = _reference(x, adj, weight, D=None)
    assert out.shape == (B, N, PLANES)
    assert jnp.allclose(out, ref, atol=1e-4, rtol=1e-4), "mismatch vs reference"

    # Optional D normalization path (degree tensor, strictly positive here).
    D = jnp.sum(adj, axis=-1, keepdims=True)  # (B, N, 1)
    out_d = jax.block_until_ready(basic_block(x, adj, weight, D=D))
    ref_d = _reference(x, adj, weight, D=D)
    assert jnp.allclose(out_d, ref_d, atol=1e-4, rtol=1e-4), "mismatch (D path)"

    # bf16-input / f32-accumulate fast path (looser tolerance by construction).
    out_bf = jax.block_until_ready(basic_block(x, adj, weight, D=None, use_bf16=True))
    assert jnp.allclose(out_bf, ref, atol=5e-2, rtol=5e-2), "mismatch (bf16 path)"

    print("KERNEL_OK")
</pallas_src>

<mosaic_0001>
module attributes {stable_mosaic.version = 11 : i64} {
  func.func @_xw_kernel(%arg0: i32, %arg1: memref<32x32xf32, #tpu.memory_space<vmem>>, %arg2: memref<32x128xf32, #tpu.memory_space<vmem>>, %arg3: memref<32x128xf32, #tpu.memory_space<vmem>>) attributes {dimension_semantics = [#tpu.dimension_semantics<parallel>], iteration_bounds = array<i64: 1>, scalar_prefetch = 0 : i64, scratch_operands = 0 : i64, tpu.core_type = #tpu.core_type<tc>, window_params = [{transform_indices = @transform_0, window_bounds = array<i64: 32, 32>}, {pipeline_mode = #tpu.pipeline_mode<synchronous>, transform_indices = @transform_1, window_bounds = array<i64: 32, 128>}, {transform_indices = @transform_2, window_bounds = array<i64: 32, 128>}]} {
    %c0 = arith.constant 0 : index
    %c0_0 = arith.constant 0 : index
    %0 = vector.load %arg1[%c0, %c0_0] : memref<32x32xf32, #tpu.memory_space<vmem>>, vector<32x32xf32>
    %c0_1 = arith.constant 0 : index
    %c0_2 = arith.constant 0 : index
    %1 = vector.load %arg2[%c0_1, %c0_2] : memref<32x128xf32, #tpu.memory_space<vmem>>, vector<32x128xf32>
    %cst = arith.constant dense<0.000000e+00> : vector<32x128xf32>
    %2 = tpu.matmul %0, %1, %cst {dimension_numbers = #tpu.dot_dimension_numbers<[1], [0], [0], [1], [0, 0, 1, 1], [], []>} : vector<32x32xf32>, vector<32x128xf32>, vector<32x128xf32> -> vector<32x128xf32>
    %c0_3 = arith.constant 0 : index
    %c0_4 = arith.constant 0 : index
    %3 = vector.load %arg3[%c0_3, %c0_4] : memref<32x128xf32, #tpu.memory_space<vmem>>, vector<32x128xf32>
    tpu.vector_store %arg3[%c0_3, %c0_4], %2 {strides = array<i32>} : memref<32x128xf32, #tpu.memory_space<vmem>>, vector<32x128xf32>,
    return
  }
  func.func @transform_0(%arg0: i32) -> (i32, i32) {
    %c0_i32 = arith.constant 0 : i32
    %c0_i32_0 = arith.constant 0 : i32
    return %arg0, %c0_i32 : i32, i32
  }
  func.func @transform_1(%arg0: i32) -> (i32, i32) {
    %c0_i32 = arith.constant 0 : i32
    %c0_i32_0 = arith.constant 0 : i32
    %c0_i32_1 = arith.constant 0 : i32
    return %c0_i32, %c0_i32_0 : i32, i32
  }
  func.func @transform_2(%arg0: i32) -> (i32, i32) {
    %c0_i32 = arith.constant 0 : i32
    %c0_i32_0 = arith.constant 0 : i32
    return %arg0, %c0_i32 : i32, i32
  }
}

module attributes {stable_mosaic.version = 11 : i64} {
  func.func @_aggregate_kernel(%arg0: i32, %arg1: i32, %arg2: i32, %arg3: memref<2x16x16xf32, #tpu.memory_space<vmem>>, %arg4: memref<2x16x128xf32, #tpu.memory_space<vmem>>, %arg5: memref<2x16x128xf32, #tpu.memory_space<vmem>>, %arg6: memref<2x16x128xf32, #tpu.memory_space<vmem>>) attributes {dimension_semantics = [#tpu.dimension_semantics<parallel>, #tpu.dimension_semantics<parallel>, #tpu.dimension_semantics<arbitrary>], iteration_bounds = array<i64: 1, 1, 1>, scalar_prefetch = 0 : i64, scratch_operands = 1 : i64, tpu.core_type = #tpu.core_type<tc>, window_params = [{transform_indices = @transform_0, window_bounds = array<i64: 2, 16, 16>}, {transform_indices = @transform_1, window_bounds = array<i64: 2, 16, 128>}, {transform_indices = @transform_2, window_bounds = array<i64: 2, 16, 128>}]} {
    %c0_i32 = arith.constant 0 : i32
    %0 = arith.cmpi eq, %arg2, %c0_i32 : i32
    %1 = arith.extui %0 : i1 to i32
    %c0_i32_0 = arith.constant 0 : i32
    %2 = arith.cmpi ne, %1, %c0_i32_0 : i32
    scf.if %2 {
      %cst_14 = arith.constant 0.000000e+00 : f32
      %12 = vector.broadcast %cst_14 : f32 to vector<2x16x128xf32>
      %c0_15 = arith.constant 0 : index
      %c0_16 = arith.constant 0 : index
      %c0_17 = arith.constant 0 : index
      %13 = vector.load %arg6[%c0_15, %c0_16, %c0_17] : memref<2x16x128xf32, #tpu.memory_space<vmem>>, vector<2x16x128xf32>
      tpu.vector_store %arg6[%c0_15, %c0_16, %c0_17], %12 {strides = array<i32>} : memref<2x16x128xf32, #tpu.memory_space<vmem>>, vector<2x16x128xf32>,
    } else {
    }
    %c0 = arith.constant 0 : index
    %c0_1 = arith.constant 0 : index
    %c0_2 = arith.constant 0 : index
    %3 = vector.load %arg6[%c0, %c0_1, %c0_2] : memref<2x16x128xf32, #tpu.memory_space<vmem>>, vector<2x16x128xf32>
    %c0_3 = arith.constant 0 : index
    %c0_4 = arith.constant 0 : index
    %c0_5 = arith.constant 0 : index
    %4 = vector.load %arg3[%c0_3, %c0_4, %c0_5] : memref<2x16x16xf32, #tpu.memory_space<vmem>>, vector<2x16x16xf32>
    %c0_6 = arith.constant 0 : index
    %c0_7 = arith.constant 0 : index
    %c0_8 = arith.constant 0 : index
    %5 = vector.load %arg4[%c0_6, %c0_7, %c0_8] : memref<2x16x128xf32, #tpu.memory_space<vmem>>, vector<2x16x128xf32>
    "tpu.trace_start"() <{level = 10 : i32, message = "bmk,bkf->bmf"}> : () -> ()
    %cst = arith.constant dense<0.000000e+00> : vector<2x16x128xf32>
    %6 = tpu.matmul %4, %5, %cst {dimension_numbers = #tpu.dot_dimension_numbers<[2], [1], [1], [2], [0, 0, 0, 1, 1, 2], [0], [0]>} : vector<2x16x16xf32>, vector<2x16x128xf32>, vector<2x16x128xf32> -> vector<2x16x128xf32>
    "tpu.trace_stop"() : () -> ()
    %7 = arith.addf %3, %6 : vector<2x16x128xf32>
    %c0_9 = arith.constant 0 : index
    %c0_10 = arith.constant 0 : index
    %c0_11 = arith.constant 0 : index
    %8 = vector.load %arg6[%c0_9, %c0_10, %c0_11] : memref<2x16x128xf32, #tpu.memory_space<vmem>>, vector<2x16x128xf32>
    tpu.vector_store %arg6[%c0_9, %c0_10, %c0_11], %7 {strides = array<i32>} : memref<2x16x128xf32, #tpu.memory_space<vmem>>, vector<2x16x128xf32>,
    %c0_i32_12 = arith.constant 0 : i32
    %9 = arith.cmpi eq, %arg2, %c0_i32_12 : i32
    %10 = arith.extui %9 : i1 to i32
    %c0_i32_13 = arith.constant 0 : i32
    %11 = arith.cmpi ne, %10, %c0_i32_13 : i32
    scf.if %11 {
      %c0_14 = arith.constant 0 : index
      %c0_15 = arith.constant 0 : index
      %c0_16 = arith.constant 0 : index
      %12 = vector.load %arg6[%c0_14, %c0_15, %c0_16] : memref<2x16x128xf32, #tpu.memory_space<vmem>>, vector<2x16x128xf32>
      %cst_17 = arith.constant 0.000000e+00 : f32
      %13 = vector.broadcast %cst_17 : f32 to vector<2x16x128xf32>
      %14 = arith.maximumf %12, %13 : vector<2x16x128xf32>
      %c0_18 = arith.constant 0 : index
      %c0_19 = arith.constant 0 : index
      %c0_20 = arith.constant 0 : index
      %15 = vector.load %arg5[%c0_18, %c0_19, %c0_20] : memref<2x16x128xf32, #tpu.memory_space<vmem>>, vector<2x16x128xf32>
      tpu.vector_store %arg5[%c0_18, %c0_19, %c0_20], %14 {strides = array<i32>} : memref<2x16x128xf32, #tpu.memory_space<vmem>>, vector<2x16x128xf32>,
    } else {
    }
    return
  }
  func.func @transform_0(%arg0: i32, %arg1: i32, %arg2: i32) -> (i32, i32, i32) {
    %c0_i32 = arith.constant 0 : i32
    return %arg0, %arg1, %arg2 : i32, i32, i32
  }
  func.func @transform_1(%arg0: i32, %arg1: i32, %arg2: i32) -> (i32, i32, i32) {
    %c0_i32 = arith.constant 0 : i32
    %c0_i32_0 = arith.constant 0 : i32
    return %arg0, %arg2, %c0_i32 : i32, i32, i32
  }
  func.func @transform_2(%arg0: i32, %arg1: i32, %arg2: i32) -> (i32, i32, i32) {
    %c0_i32 = arith.constant 0 : i32
    %c0_i32_0 = arith.constant 0 : i32
    return %arg0, %arg1, %c0_i32 : i32, i32, i32
  }
}

</mosaic_0001>

<bundles_post_ra>
// kernel: basic_block.2
= control target key start
LH: loop header
LB: loop body
LE: loop exit
PB: predicated region body
PF: predicated region fallthrough
CT: control target
= control target key end

     0   :  { %vm19_vm0 = vcmask 261120   ;;  %s218_s1 = inlined_call_operand.vmem [shape: f32[32,128], index: 1, kind: input, shape index: {}]   ;;  %s219_s0 = inlined_call_operand.vmem [shape: f32[32,32], index: 0, kind: input, shape index: {}]   ;;  %s220_s2 = inlined_call_operand.vmem [shape: f32[32,128], index: 2, kind: output, shape index: {}]  }
   0x1   :  { %v15_v0 = vld [vmem:[%s218_s1] sm:$0xff]  ;;  %v16_v1 = vld [vmem:[%s218_s1 + $0x8] sm:$0xff]  ;;  %v17_v2 = vld [vmem:[%s218_s1 + $0x10] sm:$0xff] }
   0x2   :  { %v151_v3 = vpack.c.bf16 %v16_v1, %v15_v0  ;;  %v18_v4 = vld [vmem:[%s218_s1 + $0x18] sm:$0xff]  ;;  %v11_v5 = vld [vmem:[%s219_s0] sm:$0xff]  ;;  %v13_v6 = vld [vmem:[%s219_s0 + $0x10] sm:$0xff] }
   0x3   :  { %v155_v7 = vpack.c.bf16 %v18_v4, %v17_v2  ;;  %145 = vmatprep.mubr.msk.f32.mxu0 %vm19_vm0, %v11_v5  ;;  %148 = vmatprep.mubr.msk.f32.mxu1 %vm19_vm0, %v13_v6  ;;  %v12_v8 = vld [vmem:[%s219_s0 + $0x8] sm:$0xff]  ;;  %v14_v9 = vld [vmem:[%s219_s0 + $0x18] sm:$0xff] }
   0x4   :  { %152 = vmatprep.subr.bf16.mxu0 %v151_v3  ;;  %159 = vmatprep.subr.bf16.mxu1 %v151_v3 }
   0x5   :  { %154 = vmatpush3.bf16.msra.mxu0 %v151_v3  ;;  %161 = vmatpush3.bf16.msra.mxu1 %v151_v3 }
   0x6   :  { %156 = vmatprep.subr.bf16.mxu0 %v155_v7  ;;  %160 = vmatprep.subr.bf16.mxu1 %v155_v7 }
   0x9   :  { %158 = vmatpush3.bf16.msra.mxu0 %v155_v7  ;;  %162 = vmatpush3.bf16.msra.mxu1 %v155_v7 }
   0xc   :  { %146 = vmatmul.mubr.msk.f32.vlgmr.msra.gmra.mrb[0].mxu0 %vm19_vm0, %v12_v8  ;;  %149 = vmatmul.mubr.msk.f32.vlgmr.msra.gmra.mrb[0].mxu1 %vm19_vm0, %v14_v9 }
  0xdf   :  { %v147_v10 = vpop.f32.mrb[0].mxu0  ;;  %v150_v11 = vpop.f32.mrb[0].mxu1 }
  0xe0   :  { %118 = vst [vmem:[%s220_s2 + $0x8] sm:$0xff] %v147_v10  ;;  %120 = vst [vmem:[%s220_s2 + $0x18] sm:$0xff] %v150_v11  ;;  %v98_v12 = vpop.f32.mrb[1].mxu0  ;;  %v108_v13 = vpop.f32.mrb[1].mxu1 }
  0xe1   :  { %117 = vst [vmem:[%s220_s2] sm:$0xff] %v98_v12  ;;  %119 = vst [vmem:[%s220_s2 + $0x10] sm:$0xff] %v108_v13 }

// kernel: basic_block.3
= control target key start
LH: loop header
LB: loop body
LE: loop exit
PB: predicated region body
PF: predicated region fallthrough
CT: control target
= control target key end

     0   :  { %vm32_vm0 = vcmask 130048   ;;  %s353_s0 = inlined_call_operand.vmem [shape: f32[2,16,16], index: 0, kind: input, shape index: {}]   ;;  %s354_s1 = inlined_call_operand.vmem [shape: f32[2,16,128], index: 1, kind: input, shape index: {}]   ;;  %s355_s2 = inlined_call_operand.hbm [shape: f32[2,16,128], index: 2, kind: output, shape index: {}]  }
   0x1   :  { %v28_v0 = vld [vmem:[%s354_s1] sm:$0xff]  ;;  %v29_v1 = vld [vmem:[%s354_s1 + $0x8] sm:$0xff]  ;;  %v30_v2 = vld [vmem:[%s354_s1 + $0x10] sm:$0xff] }
   0x2   :  { %v260_v3 = vpack.c.bf16 %v29_v1, %v28_v0  ;;  %v31_v4 = vld [vmem:[%s354_s1 + $0x18] sm:$0xff]  ;;  %v24_v5 = vld [vmem:[%s353_s0] sm:$0xff]  ;;  %v26_v6 = vld [vmem:[%s353_s0 + $0x10] sm:$0xff] }
   0x3   :  { %v264_v7 = vpack.c.bf16 %v31_v4, %v30_v2  ;;  %250 = vmatprep.mubr.msk.f32.mxu0 %vm32_vm0, %v24_v5  ;;  %257 = vmatprep.mubr.msk.f32.mxu1 %vm32_vm0, %v26_v6 }
   0x4   :  { %7 = vsyncpa [#allocation4], 0  ;;  %261 = vmatprep.subr.bf16.mxu0 %v260_v3  ;;  %v25_v8 = vld [vmem:[%s353_s0 + $0x8] sm:$0xff]  ;;  %v27_v9 = vld [vmem:[%s353_s0 + $0x18] sm:$0xff]  ;;  %s295_s24 = smov [#allocation3]  }
   0x5   :  { %265 = vmatprep.subr.bf16.mxu1 %v264_v7  ;;  %263 = vmatpush3.bf16.msra.mxu0 %v260_v3  ;;  %s223_s25 = sshll.u32 %s295_s24, 4  ;;  %s224_s25 = int_to_ptr.vmem [resolvable:$true] %s223_s25 }
   0x6   :  { %267 = vmatpush3.bf16.msra.mxu1 %v264_v7  ;;  %s271_s0 = scalar_lea.vmem %s224_s25, 512  ;;  %p276_p1 = scmp.lt.s32.totalorder %s224_s25, %s224_s25 }
   0x7   :  { %p272_p0 = scmp.ne.s32.totalorder %s224_s25, %s271_s0  ;;  %p277_p2 = scmp.lt.s32.totalorder %s271_s0, %s271_s0 }
   0x8   :  { %251 = vmatmul.mubr.msk.f32.vlgmr.msra.gmra.mrb[0].mxu0 %vm32_vm0, %v25_v8 }
   0x9   :  { %258 = vmatmul.mubr.msk.f32.vlgmr.msra.gmra.mrb[0].mxu1 %vm32_vm0, %v27_v9  ;;  %p278_p3 = por %p277_p2, %p276_p1 }
   0xb   :  { %p279_p4 = pnand %p278_p3, %p272_p0 }
  0xdb   :  { %v252_v10 = vpop.f32.mrb[0].mxu0 }
  0xdc   :  { %v211_v11 = vmax.f32 %v252_v10, 0.0  ;;  %v259_v12 = vpop.f32.mrb[0].mxu1  ;;  %v105_v13 = vpop.f32.mrb[1].mxu0 }
  0xdd   :  { %v213_v14 = vmax.f32 %v259_v12, 0.0  ;;  %v210_v15 = vmax.f32 %v105_v13, 0.0  ;;  %v186_v16 = vpop.f32.mrb[1].mxu1 }
  0xde   :  { %215 = vst [vmem:[#allocation3 + $0x8] sm:$0xff] %v211_v11  ;;  %v212_v17 = vmax.f32 %v186_v16, 0.0 }
  0xdf   :  { %217 = vst [vmem:[#allocation3 + $0x18] sm:$0xff] %v213_v14  ;;  %214 = vst [vmem:[#allocation3] sm:$0xff] %v210_v15 }
  0xe0   :  { %216 = vst [vmem:[#allocation3 + $0x10] sm:$0xff] %v212_v17 }
  0xe1   :  { %282 = shalt.err (!%p279_p4)
}
  0xe2   :  { %s283_s28 = scalar_lea.hbm %s355_s2, 512 }
  0xe3   :  { %p284_p5 = scmp.ne.s32.totalorder %s355_s2, %s283_s28  ;;  %p287_p6 = scmp.lt.u32.totalorder %s283_s28, %s355_s2 }
  0xe5   :  { %p289_p7 = pnand %p287_p6, %p284_p5 }
  0xe7   :  { %292 = shalt.err (!%p289_p7)
}
  0xe8   :  { %s296_s5 = smov 128   ;;  %s297_s6 = smov 8  }
  0xe9   :  { %229 = dma.vmem_to_hbm [thread:$0]  %s224_s25, 512, %s355_s2, [#allocation4], %s296_s5, %s296_s5, %s297_s6  }
  0xea   :  { %293 = dma.done.wait [#allocation4], 512  }
  0xeb   :  { %294 = vsyncadd [#allocation4], 4294966784 }
  0xec   :  { %233 = vsyncpa [#allocation4], 1 }

</bundles_post_ra>
